<compile_context>
chip_gen: v6e
topology: v6e:2x2x1
jax: 0.10.0
libtpu: 0.0.40
codegen_flags: <defaults>
</compile_context>

<pallas_src>
import jax
import jax.numpy as jnp
from jax.experimental import pallas as pl
from jax.experimental.pallas import tpu as pltpu


def _message_fusion_kernel(x_ref, h_ref, wih_ref, whh_ref, b_ref, o_ref):
    # ReLU on the VPU (f32), two accumulated MXU dots, one bias add.
    w_dtype = wih_ref.dtype
    rx = jnp.maximum(x_ref[...], 0.0).astype(w_dtype)
    rh = jnp.maximum(h_ref[...], 0.0).astype(w_dtype)
    out = jnp.dot(rx, wih_ref[...], preferred_element_type=jnp.float32)
    out = out + jnp.dot(rh, whh_ref[...], preferred_element_type=jnp.float32)
    o_ref[...] = (out + b_ref[...].astype(jnp.float32)).astype(o_ref.dtype)


def prepare_message_fusion_params(wih, bih, whh, bhh, param_dtype=jnp.float32):
    """One-time parameter prep (call at model init, NOT per forward).

    wih, whh: [D, D] in PyTorch nn.Linear [out, in] layout.  bih, bhh: [D].
    Returns (wih_T [D, D], whh_T [D, D]) in [in, out] layout cast to
    `param_dtype` (use jnp.bfloat16 on v6e/v7x for the bandwidth/MXU win),
    and the pre-summed bias b_cat [1, D] kept in f32.
    """
    wih_t = wih.T.astype(param_dtype)
    whh_t = whh.T.astype(param_dtype)
    b_cat = (bih + bhh).reshape(1, -1).astype(jnp.float32)
    return wih_t, whh_t, b_cat


def message_fusion(x, hidden, wih_t, whh_t, b_cat, *, tm=512):
    """x, hidden: [N, D]; wih_t, whh_t: [D, D]; b_cat: [1, D]. Returns [N, D]."""
    N, D = x.shape
    if N <= tm:
        # Single grid step; block == full array extent, so any N is legal
        # (no (8,128) divisibility requirement when the block covers the dim).
        tm = N
    else:
        # Keep tm a sublane multiple so row-tile stores stay unmasked; the
        # (possibly padded) last block is handled by Pallas masking.
        tm = max(8, (tm // 8) * 8)
    grid = (pl.cdiv(N, tm),)

    row_spec = pl.BlockSpec((tm, D), lambda i: (i, 0))        # tiles over N
    # Constant-index weight / bias blocks: single-buffered (no DMA churn,
    # half the VMEM footprint of the default 2-deep pipeline).
    wih_spec = pl.BlockSpec((D, D), lambda i: (0, 0), pipeline_mode=pl.Buffered(1))
    whh_spec = pl.BlockSpec((D, D), lambda i: (0, 0), pipeline_mode=pl.Buffered(1))
    b_spec = pl.BlockSpec((1, D), lambda i: (0, 0), pipeline_mode=pl.Buffered(1))

    # VMEM budget: double-buffered x / h / out row tiles + single-buffered
    # weights + bias, with ~2x headroom for compiler scratch.
    act_bytes = tm * D * jnp.dtype(x.dtype).itemsize
    out_bytes = tm * D * jnp.dtype(x.dtype).itemsize
    w_bytes = 2 * D * D * jnp.dtype(wih_t.dtype).itemsize
    b_bytes = D * 4
    vmem_needed = 2 * (2 * act_bytes + out_bytes) + w_bytes + b_bytes
    vmem_limit = int(min(max(2 * vmem_needed, 8 << 20), 100 << 20))

    return pl.pallas_call(
        _message_fusion_kernel,
        out_shape=jax.ShapeDtypeStruct((N, D), x.dtype),
        grid=grid,
        in_specs=[
            row_spec,      # x tile
            row_spec,      # hidden tile
            wih_spec,      # wih^T (VMEM resident, single buffer)
            whh_spec,      # whh^T (VMEM resident, single buffer)
            b_spec,        # pre-summed bias
        ],
        out_specs=row_spec,
        compiler_params=pltpu.CompilerParams(
            dimension_semantics=("parallel",),
            vmem_limit_bytes=vmem_limit),
    )(x, hidden, wih_t, whh_t, b_cat)


def reference(x, hidden, wih, bih, whh, bhh):
    rx = jnp.maximum(x, 0.0)
    rh = jnp.maximum(hidden, 0.0)
    return rx @ wih.T + bih + rh @ whh.T + bhh


if __name__ == "__main__":
    key = jax.random.PRNGKey(0)
    # Small but lane/sublane aligned: 256 relation nodes, input_dim = 128.
    N, D = 256, 128

    k1, k2, k3, k4, k5, k6 = jax.random.split(key, 6)
    x = jax.random.normal(k1, (N, D), dtype=jnp.float32)
    hidden = jax.random.normal(k2, (N, D), dtype=jnp.float32)

    # Deterministic nn.Linear-style init (uniform in +-1/sqrt(D)).
    bound = 1.0 / (D ** 0.5)
    wih = jax.random.uniform(k3, (D, D), jnp.float32, -bound, bound)
    bih = jax.random.uniform(k4, (D,), jnp.float32, -bound, bound)
    whh = jax.random.uniform(k5, (D, D), jnp.float32, -bound, bound)
    bhh = jax.random.uniform(k6, (D,), jnp.float32, -bound, bound)

    # TODO(synk): F.dropout(training=True) path not implemented; module is run
    # in eval mode where dropout is the identity.

    # --- f32 path (exact numerics vs the PyTorch module) ------------------
    wih_t, whh_t, b_cat = prepare_message_fusion_params(wih, bih, whh, bhh)
    wih_t, whh_t, b_cat = jax.block_until_ready((wih_t, whh_t, b_cat))

    out = message_fusion(x, hidden, wih_t, whh_t, b_cat)
    out = jax.block_until_ready(out)

    ref = reference(x, hidden, wih, bih, whh, bhh)
    assert out.shape == (N, D)
    assert jnp.allclose(out, ref, atol=1e-4, rtol=1e-4), "f32 mismatch vs reference"

    # --- bf16 weight path (bandwidth / full-rate MXU on v6e & v7x) --------
    wih_bf, whh_bf, b_bf = prepare_message_fusion_params(
        wih, bih, whh, bhh, param_dtype=jnp.bfloat16)
    out_bf = jax.block_until_ready(message_fusion(x, hidden, wih_bf, whh_bf, b_bf))
    assert out_bf.shape == (N, D)
    assert jnp.allclose(out_bf, ref, atol=0.15, rtol=0.05), "bf16 path out of tolerance"

    print("KERNEL_OK")
</pallas_src>

<mosaic_0001>
module attributes {stable_mosaic.version = 11 : i64} {
  func.func @_message_fusion_kernel(%arg0: i32, %arg1: memref<256x128xf32, #tpu.memory_space<vmem>>, %arg2: memref<256x128xf32, #tpu.memory_space<vmem>>, %arg3: memref<128x128xf32, #tpu.memory_space<vmem>>, %arg4: memref<128x128xf32, #tpu.memory_space<vmem>>, %arg5: memref<1x128xf32, #tpu.memory_space<vmem>>, %arg6: memref<256x128xf32, #tpu.memory_space<vmem>>) attributes {dimension_semantics = [#tpu.dimension_semantics<parallel>], iteration_bounds = array<i64: 1>, scalar_prefetch = 0 : i64, scratch_operands = 0 : i64, tpu.core_type = #tpu.core_type<tc>, window_params = [{transform_indices = @transform_0, window_bounds = array<i64: 256, 128>}, {transform_indices = @transform_1, window_bounds = array<i64: 256, 128>}, {pipeline_mode = #tpu.pipeline_mode<synchronous>, transform_indices = @transform_2, window_bounds = array<i64: 128, 128>}, {pipeline_mode = #tpu.pipeline_mode<synchronous>, transform_indices = @transform_3, window_bounds = array<i64: 128, 128>}, {pipeline_mode = #tpu.pipeline_mode<synchronous>, transform_indices = @transform_4, window_bounds = array<i64: 1, 128>}, {transform_indices = @transform_5, window_bounds = array<i64: 256, 128>}]} {
    %c0 = arith.constant 0 : index
    %c0_0 = arith.constant 0 : index
    %0 = vector.load %arg1[%c0, %c0_0] : memref<256x128xf32, #tpu.memory_space<vmem>>, vector<256x128xf32>
    %cst = arith.constant 0.000000e+00 : f32
    %1 = vector.broadcast %cst : f32 to vector<256x128xf32>
    %2 = arith.maximumf %0, %1 : vector<256x128xf32>
    %c0_1 = arith.constant 0 : index
    %c0_2 = arith.constant 0 : index
    %3 = vector.load %arg2[%c0_1, %c0_2] : memref<256x128xf32, #tpu.memory_space<vmem>>, vector<256x128xf32>
    %cst_3 = arith.constant 0.000000e+00 : f32
    %4 = vector.broadcast %cst_3 : f32 to vector<256x128xf32>
    %5 = arith.maximumf %3, %4 : vector<256x128xf32>
    %c0_4 = arith.constant 0 : index
    %c0_5 = arith.constant 0 : index
    %6 = vector.load %arg3[%c0_4, %c0_5] : memref<128x128xf32, #tpu.memory_space<vmem>>, vector<128x128xf32>
    %cst_6 = arith.constant dense<0.000000e+00> : vector<256x128xf32>
    %7 = tpu.matmul %2, %6, %cst_6 {dimension_numbers = #tpu.dot_dimension_numbers<[1], [0], [0], [1], [0, 0, 1, 1], [], []>} : vector<256x128xf32>, vector<128x128xf32>, vector<256x128xf32> -> vector<256x128xf32>
    %c0_7 = arith.constant 0 : index
    %c0_8 = arith.constant 0 : index
    %8 = vector.load %arg4[%c0_7, %c0_8] : memref<128x128xf32, #tpu.memory_space<vmem>>, vector<128x128xf32>
    %cst_9 = arith.constant dense<0.000000e+00> : vector<256x128xf32>
    %9 = tpu.matmul %5, %8, %cst_9 {dimension_numbers = #tpu.dot_dimension_numbers<[1], [0], [0], [1], [0, 0, 1, 1], [], []>} : vector<256x128xf32>, vector<128x128xf32>, vector<256x128xf32> -> vector<256x128xf32>
    %10 = arith.addf %7, %9 : vector<256x128xf32>
    %c0_10 = arith.constant 0 : index
    %c0_11 = arith.constant 0 : index
    %11 = vector.load %arg5[%c0_10, %c0_11] : memref<1x128xf32, #tpu.memory_space<vmem>>, vector<1x128xf32>
    %12 = vector.broadcast %11 : vector<1x128xf32> to vector<256x128xf32>
    %13 = arith.addf %10, %12 : vector<256x128xf32>
    %c0_12 = arith.constant 0 : index
    %c0_13 = arith.constant 0 : index
    %14 = vector.load %arg6[%c0_12, %c0_13] : memref<256x128xf32, #tpu.memory_space<vmem>>, vector<256x128xf32>
    tpu.vector_store %arg6[%c0_12, %c0_13], %13 {strides = array<i32>} : memref<256x128xf32, #tpu.memory_space<vmem>>, vector<256x128xf32>,
    return
  }
  func.func @transform_0(%arg0: i32) -> (i32, i32) {
    %c0_i32 = arith.constant 0 : i32
    %c0_i32_0 = arith.constant 0 : i32
    return %arg0, %c0_i32 : i32, i32
  }
  func.func @transform_1(%arg0: i32) -> (i32, i32) {
    %c0_i32 = arith.constant 0 : i32
    %c0_i32_0 = arith.constant 0 : i32
    return %arg0, %c0_i32 : i32, i32
  }
  func.func @transform_2(%arg0: i32) -> (i32, i32) {
    %c0_i32 = arith.constant 0 : i32
    %c0_i32_0 = arith.constant 0 : i32
    %c0_i32_1 = arith.constant 0 : i32
    return %c0_i32, %c0_i32_0 : i32, i32
  }
  func.func @transform_3(%arg0: i32) -> (i32, i32) {
    %c0_i32 = arith.constant 0 : i32
    %c0_i32_0 = arith.constant 0 : i32
    %c0_i32_1 = arith.constant 0 : i32
    return %c0_i32, %c0_i32_0 : i32, i32
  }
  func.func @transform_4(%arg0: i32) -> (i32, i32) {
    %c0_i32 = arith.constant 0 : i32
    %c0_i32_0 = arith.constant 0 : i32
    %c0_i32_1 = arith.constant 0 : i32
    return %c0_i32, %c0_i32_0 : i32, i32
  }
  func.func @transform_5(%arg0: i32) -> (i32, i32) {
    %c0_i32 = arith.constant 0 : i32
    %c0_i32_0 = arith.constant 0 : i32
    return %arg0, %c0_i32 : i32, i32
  }
}

</mosaic_0001>

<bundles_post_ra>
// kernel: tpu_custom_call.1
= control target key start
LH: loop header
LB: loop body
LE: loop exit
PB: predicated region body
PF: predicated region fallthrough
CT: control target
= control target key end

     0   :  { %10 = vsyncpa [#allocation3], 0  ;;  %s1252_s0 = inlined_call_operand.hbm [shape: f32[256,128], index: 0, kind: input, shape index: {}]   ;;  %s1253_s1 = inlined_call_operand.hbm [shape: f32[256,128], index: 1, kind: input, shape index: {}]   ;;  %s1254_s2 = inlined_call_operand.hbm [shape: f32[128,128], index: 2, kind: input, shape index: {}]   ;;  %s1255_s3 = inlined_call_operand.hbm [shape: f32[128,128], index: 3, kind: input, shape index: {}]   ;;  %s1256_s4 = inlined_call_operand.vmem [shape: f32[1,128], index: 4, kind: input, shape index: {}]   ;;  %s1257_s5 = inlined_call_operand.hbm [shape: f32[256,128], index: 5, kind: output, shape index: {}]  }
   0x1   :  { %11 = vsyncpa [#allocation6], 0 }
   0x2   :  { %12 = vsyncpa [#allocation9], 0 }
   0x3   :  { %13 = vsyncpa [#allocation4], 0  ;;  %s1148_s18 = smov [#allocation5]   ;;  %s1149_s20 = smov [#allocation2]  }
   0x4   :  { %s31_s19 = sshll.u32 %s1148_s18, 4  ;;  %s19_s21 = sshll.u32 %s1149_s20, 4  ;;  %s32_s19 = int_to_ptr.vmem [resolvable:$true] %s31_s19  ;;  %s20_s21 = int_to_ptr.vmem [resolvable:$true] %s19_s21 }
   0x5   :  { %s1048_s22 = scalar_lea.vmem %s32_s19, 4096  ;;  %p1053_p1 = scmp.lt.s32.totalorder %s32_s19, %s32_s19 }
   0x6   :  { %p1049_p0 = scmp.ne.s32.totalorder %s32_s19, %s1048_s22  ;;  %p1054_p2 = scmp.lt.s32.totalorder %s1048_s22, %s1048_s22 }
   0x8   :  { %p1055_p3 = por %p1054_p2, %p1053_p1 }
   0xa   :  { %p1056_p4 = pnand %p1055_p3, %p1049_p0 }
   0xc   :  { %1059 = shalt.err (!%p1056_p4)
}
   0xd   :  { %s1150_s23 = smov 128   ;;  %s1151_s24 = smov 8  }
   0xe   :  { %37 = dma.hbm_to_vmem [thread:$0]  %s1253_s1, 4096, %s32_s19, [#allocation6], %s1150_s23, %s1150_s23, %s1151_s24  }
   0xf   :  { %s1068_s27 = scalar_lea.vmem %s20_s21, 4096  ;;  %p1073_p6 = scmp.lt.s32.totalorder %s20_s21, %s20_s21 }
  0x10   :  { %p1069_p5 = scmp.ne.s32.totalorder %s20_s21, %s1068_s27  ;;  %p1074_p7 = scmp.lt.s32.totalorder %s1068_s27, %s1068_s27 }
  0x12   :  { %p1075_p8 = por %p1074_p7, %p1073_p6 }
  0x14   :  { %p1076_p9 = pnand %p1075_p8, %p1069_p5 }
  0x16   :  { %1079 = shalt.err (!%p1076_p9)
}
  0x17   :  { %25 = dma.hbm_to_vmem [thread:$0]  %s1252_s0, 4096, %s20_s21, [#allocation3], %s1150_s23, %s1150_s23, %s1151_s24  }
  0x18   :  { %s1152_s30 = smov [#allocation7]   ;;  %s1153_s7 = smov [#allocation8]  }
  0x19   :  { %s43_s6 = sshll.u32 %s1152_s30, 4  ;;  %s55_s8 = sshll.u32 %s1153_s7, 4  ;;  %s44_s6 = int_to_ptr.vmem [resolvable:$true] %s43_s6  ;;  %s56_s8 = int_to_ptr.vmem [resolvable:$true] %s55_s8 }
  0x1a   :  { %s1088_s1 = scalar_lea.vmem %s44_s6, 2048  ;;  %p1093_p11 = scmp.lt.s32.totalorder %s44_s6, %s44_s6 }
  0x1b   :  { %p1089_p10 = scmp.ne.s32.totalorder %s44_s6, %s1088_s1  ;;  %p1094_p12 = scmp.lt.s32.totalorder %s1088_s1, %s1088_s1 }
  0x1d   :  { %p1095_p13 = por %p1094_p12, %p1093_p11 }
  0x1f   :  { %p1096_p0 = pnand %p1095_p13, %p1089_p10 }
  0x21   :  { %1099 = shalt.err (!%p1096_p0)
}
  0x22   :  { %49 = dma.hbm_to_vmem [thread:$0]  %s1254_s2, 2048, %s44_s6, [#allocation6], %s1150_s23, %s1150_s23, %s1151_s24  }
  0x23   :  { %s1108_s0 = scalar_lea.vmem %s56_s8, 2048  ;;  %p1113_p2 = scmp.lt.s32.totalorder %s56_s8, %s56_s8 }
  0x24   :  { %p1109_p1 = scmp.ne.s32.totalorder %s56_s8, %s1108_s0  ;;  %p1114_p3 = scmp.lt.s32.totalorder %s1108_s0, %s1108_s0 }
  0x26   :  { %p1115_p4 = por %p1114_p3, %p1113_p2 }
  0x28   :  { %p1116_p5 = pnand %p1115_p4, %p1109_p1 }
  0x2a   :  { %1119 = shalt.err (!%p1116_p5)
}
  0x2b   :  { %61 = dma.hbm_to_vmem [thread:$0]  %s1255_s3, 2048, %s56_s8, [#allocation9], %s1150_s23, %s1150_s23, %s1151_s24  }
  0x2c   :  { %1140 = dma.done.wait [#allocation3], 4096  }
  0x2d   :  { %1141 = vsyncadd [#allocation3], 4294963200 }
  0x2e   :  { %1142 = dma.done.wait [#allocation6], 6144  }
  0x2f   :  { %1143 = vsyncadd [#allocation6], 4294961152 }
  0x30   :  { %1144 = dma.done.wait [#allocation9], 2048  }
  0x31   :  { %1145 = vsyncadd [#allocation9], 4294965248  ;;  %v235_v0 = vld [vmem:[#allocation8 + $0x78] sm:$0xff]  ;;  %v234_v2 = vld [vmem:[#allocation8 + $0x70] sm:$0xff] }
  0x32   :  { %v219_v1 = vld [vmem:[#allocation7 + $0x78] sm:$0xff]  ;;  %873 = vmatprep.subr.mxu0 %v235_v0  ;;  %v218_v3 = vld [vmem:[#allocation7 + $0x70] sm:$0xff]  ;;  %v233_v4 = vld [vmem:[#allocation8 + $0x68] sm:$0xff] }
  0x33   :  { %953 = vmatprep.subr.mxu1 %v219_v1  ;;  %874 = vmatpush3.msra.mxu0 %v235_v0  ;;  %v217_v5 = vld [vmem:[#allocation7 + $0x68] sm:$0xff]  ;;  %v232_v6 = vld [vmem:[#allocation8 + $0x60] sm:$0xff]  ;;  %v231_v8 = vld [vmem:[#allocation8 + $0x58] sm:$0xff] }
  0x34   :  { %954 = vmatpush3.msra.mxu1 %v219_v1  ;;  %875 = vmatprep.subr.mxu0 %v234_v2  ;;  %v216_v7 = vld [vmem:[#allocation7 + $0x60] sm:$0xff]  ;;  %v215_v9 = vld [vmem:[#allocation7 + $0x58] sm:$0xff]  ;;  %v230_v10 = vld [vmem:[#allocation8 + $0x50] sm:$0xff] }
  0x35   :  { %955 = vmatprep.subr.mxu1 %v218_v3  ;;  %876 = vmatpush3.msra.mxu0 %v234_v2  ;;  %v214_v11 = vld [vmem:[#allocation7 + $0x50] sm:$0xff]  ;;  %v229_v12 = vld [vmem:[#allocation8 + $0x48] sm:$0xff]  ;;  %v228_v14 = vld [vmem:[#allocation8 + $0x40] sm:$0xff] }
  0x36   :  { %956 = vmatpush3.msra.mxu1 %v218_v3  ;;  %877 = vmatprep.subr.mxu0 %v233_v4  ;;  %v213_v13 = vld [vmem:[#allocation7 + $0x48] sm:$0xff]  ;;  %v212_v15 = vld [vmem:[#allocation7 + $0x40] sm:$0xff]  ;;  %v227_v16 = vld [vmem:[#allocation8 + $0x38] sm:$0xff] }
  0x37   :  { %957 = vmatprep.subr.mxu1 %v217_v5  ;;  %878 = vmatpush3.msra.mxu0 %v233_v4  ;;  %v211_v17 = vld [vmem:[#allocation7 + $0x38] sm:$0xff]  ;;  %v226_v18 = vld [vmem:[#allocation8 + $0x30] sm:$0xff]  ;;  %v225_v20 = vld [vmem:[#allocation8 + $0x28] sm:$0xff] }
  0x38   :  { %958 = vmatpush3.msra.mxu1 %v217_v5  ;;  %879 = vmatprep.subr.mxu0 %v232_v6  ;;  %v210_v19 = vld [vmem:[#allocation7 + $0x30] sm:$0xff]  ;;  %v209_v21 = vld [vmem:[#allocation7 + $0x28] sm:$0xff]  ;;  %v224_v22 = vld [vmem:[#allocation8 + $0x20] sm:$0xff] }
  0x39   :  { %959 = vmatprep.subr.mxu1 %v216_v7  ;;  %880 = vmatpush3.msra.mxu0 %v232_v6  ;;  %v208_v23 = vld [vmem:[#allocation7 + $0x20] sm:$0xff]  ;;  %v223_v24 = vld [vmem:[#allocation8 + $0x18] sm:$0xff]  ;;  %v222_v26 = vld [vmem:[#allocation8 + $0x10] sm:$0xff] }
  0x3a   :  { %960 = vmatpush3.msra.mxu1 %v216_v7  ;;  %881 = vmatprep.subr.mxu0 %v231_v8  ;;  %v207_v25 = vld [vmem:[#allocation7 + $0x18] sm:$0xff]  ;;  %v206_v27 = vld [vmem:[#allocation7 + $0x10] sm:$0xff]  ;;  %v140_v28 = vld [vmem:[#allocation5] sm:$0xff] }
  0x3b   :  { %961 = vmatprep.subr.mxu1 %v215_v9  ;;  %882 = vmatpush3.msra.mxu0 %v231_v8  ;;  %v221_v29 = vld [vmem:[#allocation8 + $0x8] sm:$0xff]  ;;  %v76_v31 = vld [vmem:[#allocation2] sm:$0xff]  ;;  %v172_v36 = vmax.f32 %v140_v28, 0.0  ;;  %v142_v37 = vld [vmem:[#allocation5 + $0x10] sm:$0xff] }
  0x3c   :  { %962 = vmatpush3.msra.mxu1 %v215_v9  ;;  %883 = vmatprep.subr.mxu0 %v230_v10  ;;  %v205_v30 = vld [vmem:[#allocation7 + $0x8] sm:$0xff]  ;;  %v220_v32 = vld [vmem:[#allocation8] sm:$0xff]  ;;  %v78_v38 = vld [vmem:[#allocation2 + $0x10] sm:$0xff]  ;;  %v108_v39 = vmax.f32 %v76_v31, 0.0  ;;  %v174_v42 = vmax.f32 %v142_v37, 0.0 }
  0x3d   :  { %963 = vmatprep.subr.mxu1 %v214_v11  ;;  %884 = vmatpush3.msra.mxu0 %v230_v10  ;;  %v141_v33 = vld [vmem:[#allocation5 + $0x8] sm:$0xff]  ;;  %v204_v35 = vld [vmem:[#allocation7] sm:$0xff]  ;;  %v110_v43 = vmax.f32 %v78_v38, 0.0  ;;  %v143_v44 = vld [vmem:[#allocation5 + $0x18] sm:$0xff] }
  0x3e   :  { %964 = vmatpush3.msra.mxu1 %v214_v11  ;;  %885 = vmatprep.subr.mxu0 %v229_v12  ;;  %v77_v34 = vld [vmem:[#allocation2 + $0x8] sm:$0xff]  ;;  %v173_v40 = vmax.f32 %v141_v33, 0.0  ;;  %v79_v45 = vld [vmem:[#allocation2 + $0x18] sm:$0xff]  ;;  %v144_v46 = vld [vmem:[#allocation5 + $0x20] sm:$0xff]  ;;  %v175_v48 = vmax.f32 %v143_v44, 0.0 }
  0x3f   :  { %965 = vmatprep.subr.mxu1 %v213_v13  ;;  %886 = vmatpush3.msra.mxu0 %v229_v12  ;;  %v109_v41 = vmax.f32 %v77_v34, 0.0  ;;  %v80_v47 = vld [vmem:[#allocation2 + $0x20] sm:$0xff]  ;;  %v111_v49 = vmax.f32 %v79_v45, 0.0  ;;  %v176_v50 = vmax.f32 %v144_v46, 0.0  ;;  %v145_v52 = vld [vmem:[#allocation5 + $0x28] sm:$0xff]  ;;  %v146_v54 = vld [vmem:[#allocation5 + $0x30] sm:$0xff] }
  0x40   :  { %966 = vmatpush3.msra.mxu1 %v213_v13  ;;  %887 = vmatprep.subr.mxu0 %v228_v14  ;;  %v112_v51 = vmax.f32 %v80_v47, 0.0  ;;  %v81_v53 = vld [vmem:[#allocation2 + $0x28] sm:$0xff]  ;;  %v82_v55 = vld [vmem:[#allocation2 + $0x30] sm:$0xff]  ;;  %v177_v56 = vmax.f32 %v145_v52, 0.0  ;;  %v178_v58 = vmax.f32 %v146_v54, 0.0  ;;  %v147_v60 = vld [vmem:[#allocation5 + $0x38] sm:$0xff] }
  0x41   :  { %967 = vmatprep.subr.mxu1 %v212_v15  ;;  %888 = vmatpush3.msra.mxu0 %v228_v14  ;;  %v113_v57 = vmax.f32 %v81_v53, 0.0  ;;  %v114_v59 = vmax.f32 %v82_v55, 0.0  ;;  %v83_v61 = vld [vmem:[#allocation2 + $0x38] sm:$0xff]  ;;  %v148_v62 = vld [vmem:[#allocation5 + $0x40] sm:$0xff]  ;;  %v179_v0 = vmax.f32 %v147_v60, 0.0  ;;  %v149_v4 = vld [vmem:[#allocation5 + $0x48] sm:$0xff] }
  0x42   :  { %968 = vmatpush3.msra.mxu1 %v212_v15  ;;  %889 = vmatprep.subr.mxu0 %v227_v16  ;;  %v84_v63 = vld [vmem:[#allocation2 + $0x40] sm:$0xff]  ;;  %v115_v1 = vmax.f32 %v83_v61, 0.0  ;;  %v180_v2 = vmax.f32 %v148_v62, 0.0  ;;  %v85_v5 = vld [vmem:[#allocation2 + $0x48] sm:$0xff]  ;;  %v150_v6 = vld [vmem:[#allocation5 + $0x50] sm:$0xff]  ;;  %v181_v8 = vmax.f32 %v149_v4, 0.0 }
  0x43   :  { %969 = vmatprep.subr.mxu1 %v211_v17  ;;  %890 = vmatpush3.msra.mxu0 %v227_v16  ;;  %v116_v3 = vmax.f32 %v84_v63, 0.0  ;;  %v86_v7 = vld [vmem:[#allocation2 + $0x50] sm:$0xff]  ;;  %v117_v9 = vmax.f32 %v85_v5, 0.0  ;;  %v182_v10 = vmax.f32 %v150_v6, 0.0  ;;  %v151_v12 = vld [vmem:[#allocation5 + $0x58] sm:$0xff]  ;;  %v152_v14 = vld [vmem:[#allocation5 + $0x60] sm:$0xff] }
  0x44   :  { %970 = vmatpush3.msra.mxu1 %v211_v17  ;;  %891 = vmatprep.subr.mxu0 %v226_v18  ;;  %v118_v11 = vmax.f32 %v86_v7, 0.0  ;;  %v87_v13 = vld [vmem:[#allocation2 + $0x58] sm:$0xff]  ;;  %v88_v15 = vld [vmem:[#allocation2 + $0x60] sm:$0xff]  ;;  %v183_v16 = vmax.f32 %v151_v12, 0.0  ;;  %v93_v37 = vld [vmem:[#allocation2 + $0x88] sm:$0xff] }
  0x45   :  { %971 = vmatprep.subr.mxu1 %v210_v19  ;;  %892 = vmatpush3.msra.mxu0 %v226_v18  ;;  %v119_v17 = vmax.f32 %v87_v13, 0.0  ;;  %v184_v18 = vmax.f32 %v152_v14, 0.0  ;;  %v155_v28 = vld [vmem:[#allocation5 + $0x78] sm:$0xff]  ;;  %v92_v31 = vld [vmem:[#allocation2 + $0x80] sm:$0xff]  ;;  %v158_v38 = vld [vmem:[#allocation5 + $0x90] sm:$0xff] }
  0x46   :  { %972 = vmatpush3.msra.mxu1 %v210_v19  ;;  %893 = vmatprep.subr.mxu0 %v225_v20  ;;  %v120_v19 = vmax.f32 %v88_v15, 0.0  ;;  %v159_v44 = vld [vmem:[#allocation5 + $0x98] sm:$0xff]  ;;  %v160_v46 = vld [vmem:[#allocation5 + $0xa0] sm:$0xff]  ;;  %v161_v52 = vld [vmem:[#allocation5 + $0xa8] sm:$0xff] }
  0x47   :  { %973 = vmatprep.subr.mxu1 %v209_v21  ;;  %894 = vmatpush3.msra.mxu0 %v225_v20  ;;  %v153_v20 = vld [vmem:[#allocation5 + $0x68] sm:$0xff]  ;;  %v95_v45 = vld [vmem:[#allocation2 + $0x98] sm:$0xff]  ;;  %v96_v47 = vld [vmem:[#allocation2 + $0xa0] sm:$0xff] }
  0x48   :  { %974 = vmatpush3.msra.mxu1 %v209_v21  ;;  %895 = vmatprep.subr.mxu0 %v224_v22  ;;  %v89_v21 = vld [vmem:[#allocation2 + $0x68] sm:$0xff]  ;;  %v162_v54 = vld [vmem:[#allocation5 + $0xb0] sm:$0xff]  ;;  %v163_v60 = vld [vmem:[#allocation5 + $0xb8] sm:$0xff] }
  0x49   :  { %975 = vmatprep.subr.mxu1 %v208_v23  ;;  %896 = vmatpush3.msra.mxu0 %v224_v22  ;;  %v154_v22 = vld [vmem:[#allocation5 + $0x70] sm:$0xff]  ;;  %v97_v53 = vld [vmem:[#allocation2 + $0xa8] sm:$0xff]  ;;  %v99_v61 = vld [vmem:[#allocation2 + $0xb8] sm:$0xff] }
  0x4a   :  { %976 = vmatpush3.msra.mxu1 %v208_v23  ;;  %897 = vmatprep.subr.mxu0 %v223_v24  ;;  %v90_v23 = vld [vmem:[#allocation2 + $0x70] sm:$0xff]  ;;  %v164_v62 = vld [vmem:[#allocation5 + $0xc0] sm:$0xff]  ;;  %v165_v4 = vld [vmem:[#allocation5 + $0xc8] sm:$0xff] }
  0x4b   :  { %977 = vmatprep.subr.mxu1 %v207_v25  ;;  %898 = vmatpush3.msra.mxu0 %v223_v24  ;;  %v185_v24 = vmax.f32 %v153_v20, 0.0  ;;  %v98_v55 = vld [vmem:[#allocation2 + $0xb0] sm:$0xff]  ;;  %v100_v63 = vld [vmem:[#allocation2 + $0xc0] sm:$0xff]  ;;  %v101_v5 = vld [vmem:[#allocation2 + $0xc8] sm:$0xff] }
  0x4c   :  { %978 = vmatpush3.msra.mxu1 %v207_v25  ;;  %899 = vmatprep.subr.mxu0 %v222_v26  ;;  %v121_v25 = vmax.f32 %v89_v21, 0.0  ;;  %v166_v6 = vld [vmem:[#allocation5 + $0xd0] sm:$0xff]  ;;  %v167_v12 = vld [vmem:[#allocation5 + $0xd8] sm:$0xff]  ;;  %v168_v14 = vld [vmem:[#allocation5 + $0xe0] sm:$0xff] }
  0x4d   :  { %979 = vmatprep.subr.mxu1 %v206_v27  ;;  %900 = vmatpush3.msra.mxu0 %v222_v26  ;;  %v186_v26 = vmax.f32 %v154_v22, 0.0  ;;  %v102_v7 = vld [vmem:[#allocation2 + $0xd0] sm:$0xff]  ;;  %v103_v13 = vld [vmem:[#allocation2 + $0xd8] sm:$0xff]  ;;  %v104_v15 = vld [vmem:[#allocation2 + $0xe0] sm:$0xff] }
  0x4e   :  { %980 = vmatpush3.msra.mxu1 %v206_v27  ;;  %901 = vmatprep.subr.mxu0 %v221_v29  ;;  %v122_v27 = vmax.f32 %v90_v23, 0.0  ;;  %v169_v20 = vld [vmem:[#allocation5 + $0xe8] sm:$0xff]  ;;  %v170_v22 = vld [vmem:[#allocation5 + $0xf0] sm:$0xff] }
  0x4f   :  { %981 = vmatprep.subr.mxu1 %v205_v30  ;;  %902 = vmatpush3.msra.mxu0 %v221_v29  ;;  %v91_v29 = vld [vmem:[#allocation2 + $0x78] sm:$0xff]  ;;  %v105_v21 = vld [vmem:[#allocation2 + $0xe8] sm:$0xff]  ;;  %v106_v23 = vld [vmem:[#allocation2 + $0xf0] sm:$0xff] }
  0x50   :  { %982 = vmatpush3.msra.mxu1 %v205_v30  ;;  %903 = vmatprep.subr.mxu0 %v220_v32  ;;  %v156_v30 = vld [vmem:[#allocation5 + $0x80] sm:$0xff]  ;;  %v123_v33 = vmax.f32 %v91_v29, 0.0  ;;  %v107_v29 = vld [vmem:[#allocation2 + $0xf8] sm:$0xff] }
  0x51   :  { %983 = vmatprep.subr.mxu1 %v204_v35  ;;  %904 = vmatpush3.msra.mxu0 %v220_v32  ;;  %v187_v32 = vmax.f32 %v155_v28, 0.0  ;;  %v188_v34 = vmax.f32 %v156_v30, 0.0  ;;  %v171_v28 = vld [vmem:[#allocation5 + $0xf8] sm:$0xff] }
  0x52   :  { %905 = vmatprep.mubr.f32.mxu0 %v172_v36  ;;  %984 = vmatpush3.msra.mxu1 %v204_v35  ;;  %v124_v35 = vmax.f32 %v92_v31, 0.0  ;;  %v157_v36 = vld [vmem:[#allocation5 + $0x88] sm:$0xff]  ;;  %v203_v30 = vmax.f32 %v171_v28, 0.0  ;;  %v139_v31 = vmax.f32 %v107_v29, 0.0 }
  0x53   :  { %985 = vmatprep.mubr.f32.mxu1 %v108_v39  ;;  %906 = vmatmul.mubr.f32.vlgmr.msra.gmra.mxu0 %v173_v40  ;;  %v94_v39 = vld [vmem:[#allocation2 + $0x90] sm:$0xff]  ;;  %v189_v40 = vmax.f32 %v157_v36, 0.0 }
  0x54   :  { %986 = vmatmul.mubr.f32.vlgmr.msra.gmra.mxu1 %v109_v41  ;;  %908 = vmatprep.mubr.f32.mxu0 %v174_v42  ;;  %v125_v41 = vmax.f32 %v93_v37, 0.0  ;;  %v190_v42 = vmax.f32 %v158_v38, 0.0 }
  0x55   :  { %988 = vmatprep.mubr.f32.mxu1 %v110_v43  ;;  %v126_v43 = vmax.f32 %v94_v39, 0.0 }
  0x57   :  { %909 = vmatmul.mubr.f32.gmra.mxu0 %v175_v48  ;;  %v191_v48 = vmax.f32 %v159_v44, 0.0 }
  0x58   :  { %989 = vmatmul.mubr.f32.gmra.mxu1 %v111_v49  ;;  %911 = vmatprep.mubr.f32.mxu0 %v176_v50  ;;  %v127_v49 = vmax.f32 %v95_v45, 0.0  ;;  %v192_v50 = vmax.f32 %v160_v46, 0.0 }
  0x59   :  { %991 = vmatprep.mubr.f32.mxu1 %v112_v51  ;;  %v128_v51 = vmax.f32 %v96_v47, 0.0 }
  0x5b   :  { %912 = vmatmul.mubr.f32.gmra.mxu0 %v177_v56  ;;  %v193_v56 = vmax.f32 %v161_v52, 0.0 }
  0x5c   :  { %992 = vmatmul.mubr.f32.gmra.mxu1 %v113_v57  ;;  %914 = vmatprep.mubr.f32.mxu0 %v178_v58  ;;  %v129_v57 = vmax.f32 %v97_v53, 0.0  ;;  %v194_v58 = vmax.f32 %v162_v54, 0.0 }
  0x5d   :  { %994 = vmatprep.mubr.f32.mxu1 %v114_v59  ;;  %v130_v59 = vmax.f32 %v98_v55, 0.0 }
  0x5f   :  { %915 = vmatmul.mubr.f32.gmra.mxu0 %v179_v0  ;;  %v195_v0 = vmax.f32 %v163_v60, 0.0 }
  0x60   :  { %995 = vmatmul.mubr.f32.gmra.mxu1 %v115_v1  ;;  %917 = vmatprep.mubr.f32.mxu0 %v180_v2  ;;  %v131_v1 = vmax.f32 %v99_v61, 0.0  ;;  %v196_v2 = vmax.f32 %v164_v62, 0.0 }
  0x61   :  { %997 = vmatprep.mubr.f32.mxu1 %v116_v3  ;;  %v132_v3 = vmax.f32 %v100_v63, 0.0 }
  0x63   :  { %918 = vmatmul.mubr.f32.gmra.mxu0 %v181_v8  ;;  %v197_v8 = vmax.f32 %v165_v4, 0.0 }
  0x64   :  { %998 = vmatmul.mubr.f32.gmra.mxu1 %v117_v9  ;;  %920 = vmatprep.mubr.f32.mxu0 %v182_v10  ;;  %v133_v9 = vmax.f32 %v101_v5, 0.0  ;;  %v198_v10 = vmax.f32 %v166_v6, 0.0 }
  0x65   :  { %1000 = vmatprep.mubr.f32.mxu1 %v118_v11  ;;  %v134_v11 = vmax.f32 %v102_v7, 0.0 }
  0x67   :  { %921 = vmatmul.mubr.f32.gmra.mxu0 %v183_v16  ;;  %v199_v16 = vmax.f32 %v167_v12, 0.0 }
  0x68   :  { %1001 = vmatmul.mubr.f32.gmra.mxu1 %v119_v17  ;;  %923 = vmatprep.mubr.f32.mxu0 %v184_v18  ;;  %v135_v17 = vmax.f32 %v103_v13, 0.0  ;;  %v200_v18 = vmax.f32 %v168_v14, 0.0 }
  0x69   :  { %1003 = vmatprep.mubr.f32.mxu1 %v120_v19  ;;  %v136_v19 = vmax.f32 %v104_v15, 0.0 }
  0x6b   :  { %924 = vmatmul.mubr.f32.gmra.mxu0 %v185_v24  ;;  %v201_v24 = vmax.f32 %v169_v20, 0.0 }
  0x6c   :  { %1004 = vmatmul.mubr.f32.gmra.mxu1 %v121_v25  ;;  %926 = vmatprep.mubr.f32.mxu0 %v186_v26  ;;  %v137_v25 = vmax.f32 %v105_v21, 0.0  ;;  %v202_v26 = vmax.f32 %v170_v22, 0.0 }
  0x6d   :  { %1006 = vmatprep.mubr.f32.mxu1 %v122_v27  ;;  %v138_v27 = vmax.f32 %v106_v23, 0.0 }
  0x6f   :  { %927 = vmatmul.mubr.f32.gmra.mxu0 %v187_v32 }
  0x70   :  { %1007 = vmatmul.mubr.f32.gmra.mxu1 %v123_v33  ;;  %929 = vmatprep.mubr.f32.mxu0 %v188_v34  ;;  %v1212_v34 = vld [vmem:[%s1256_s4] ss:$0 sm:$0xff]  ;;  %s1154_s4 = smov [#allocation10]  }
  0x71   :  { %1009 = vmatprep.mubr.f32.mxu1 %v124_v35  ;;  %s762_s13 = sshll.u32 %s1154_s4, 4  ;;  %s763_s13 = int_to_ptr.vmem [resolvable:$true] %s762_s13 }
  0x72   :  { %s1120_s14 = scalar_lea.vmem %s763_s13, 4096  ;;  %p1125_p7 = scmp.lt.s32.totalorder %s763_s13, %s763_s13 }
  0x73   :  { %930 = vmatmul.mubr.f32.gmra.mxu0 %v189_v40  ;;  %p1121_p6 = scmp.ne.s32.totalorder %s763_s13, %s1120_s14  ;;  %p1126_p8 = scmp.lt.s32.totalorder %s1120_s14, %s1120_s14 }
  0x74   :  { %1010 = vmatmul.mubr.f32.gmra.mxu1 %v125_v41  ;;  %932 = vmatprep.mubr.f32.mxu0 %v190_v42 }
  0x75   :  { %1012 = vmatprep.mubr.f32.mxu1 %v126_v43  ;;  %p1127_p9 = por %p1126_p8, %p1125_p7 }
  0x77   :  { %933 = vmatmul.mubr.f32.gmra.mxu0 %v191_v48  ;;  %p1128_p10 = pnand %p1127_p9, %p1121_p6 }
  0x78   :  { %1013 = vmatmul.mubr.f32.gmra.mxu1 %v127_v49  ;;  %935 = vmatprep.mubr.f32.mxu0 %v192_v50 }
  0x79   :  { %1015 = vmatprep.mubr.f32.mxu1 %v128_v51 }
  0x7b   :  { %936 = vmatmul.mubr.f32.gmra.mxu0 %v193_v56 }
  0x7c   :  { %1016 = vmatmul.mubr.f32.gmra.mxu1 %v129_v57  ;;  %938 = vmatprep.mubr.f32.mxu0 %v194_v58 }
  0x7d   :  { %1018 = vmatprep.mubr.f32.mxu1 %v130_v59 }
  0x7f   :  { %939 = vmatmul.mubr.f32.gmra.mxu0 %v195_v0 }
  0x80   :  { %1019 = vmatmul.mubr.f32.gmra.mxu1 %v131_v1  ;;  %941 = vmatprep.mubr.f32.mxu0 %v196_v2 }
  0x81   :  { %1021 = vmatprep.mubr.f32.mxu1 %v132_v3 }
  0x83   :  { %942 = vmatmul.mubr.f32.gmra.mxu0 %v197_v8 }
  0x84   :  { %1022 = vmatmul.mubr.f32.gmra.mxu1 %v133_v9  ;;  %944 = vmatprep.mubr.f32.mxu0 %v198_v10 }
  0x85   :  { %1024 = vmatprep.mubr.f32.mxu1 %v134_v11 }
  0x87   :  { %945 = vmatmul.mubr.f32.gmra.mxu0 %v199_v16 }
  0x88   :  { %1025 = vmatmul.mubr.f32.gmra.mxu1 %v135_v17  ;;  %947 = vmatprep.mubr.f32.mxu0 %v200_v18 }
  0x89   :  { %1027 = vmatprep.mubr.f32.mxu1 %v136_v19 }
  0x8b   :  { %948 = vmatmul.mubr.f32.gmra.mxu0 %v201_v24 }
  0x8c   :  { %1028 = vmatmul.mubr.f32.gmra.mxu1 %v137_v25  ;;  %950 = vmatprep.mubr.f32.mxu0 %v202_v26 }
  0x8d   :  { %1030 = vmatprep.mubr.f32.mxu1 %v138_v27 }
  0x8f   :  { %951 = vmatmul.mubr.f32.gmra.mxu0 %v203_v30 }
  0x90   :  { %1031 = vmatmul.mubr.f32.gmra.mxu1 %v139_v31 }
 0x113   :  { %v907_v32 = vpop.f32.mrf.mxu0 }
 0x114   :  { %v987_v33 = vpop.f32.mrf.mxu1 }
 0x115   :  { %v533_v35 = vadd.f32 %v987_v33, %v907_v32  ;;  %v302_v36 = vpop.f32.mrf.mxu0 }
 0x116   :  { %v527_v37 = vpop.f32.mrf.mxu1 }
 0x117   :  { %v694_v38 = vadd.f32 %v1212_v34, %v533_v35  ;;  %v528_v39 = vadd.f32 %v527_v37, %v302_v36  ;;  %v910_v40 = vpop.f32.mrf.mxu0 }
 0x118   :  { %v990_v41 = vpop.f32.mrf.mxu1 }
 0x119   :  { %726 = vst [vmem:[#allocation10 + $0x8] sm:$0xff] %v694_v38  ;;  %v693_v42 = vadd.f32 %v1212_v34, %v528_v39  ;;  %v543_v43 = vadd.f32 %v990_v41, %v910_v40  ;;  %v312_v44 = vpop.f32.mrf.mxu0 }
 0x11a   :  { %v537_v45 = vpop.f32.mrf.mxu1 }
 0x11b   :  { %725 = vst [vmem:[#allocation10] sm:$0xff] %v693_v42  ;;  %v696_v46 = vadd.f32 %v1212_v34, %v543_v43  ;;  %v538_v47 = vadd.f32 %v537_v45, %v312_v44  ;;  %v913_v48 = vpop.f32.mrf.mxu0 }
 0x11c   :  { %v993_v49 = vpop.f32.mrf.mxu1 }
 0x11d   :  { %728 = vst [vmem:[#allocation10 + $0x18] sm:$0xff] %v696_v46  ;;  %v695_v50 = vadd.f32 %v1212_v34, %v538_v47  ;;  %v553_v51 = vadd.f32 %v993_v49, %v913_v48  ;;  %v322_v52 = vpop.f32.mrf.mxu0 }
 0x11e   :  { %v547_v53 = vpop.f32.mrf.mxu1 }
 0x11f   :  { %727 = vst [vmem:[#allocation10 + $0x10] sm:$0xff] %v695_v50  ;;  %v698_v54 = vadd.f32 %v1212_v34, %v553_v51  ;;  %v548_v55 = vadd.f32 %v547_v53, %v322_v52  ;;  %v916_v56 = vpop.f32.mrf.mxu0 }
 0x120   :  { %v996_v57 = vpop.f32.mrf.mxu1 }
 0x121   :  { %730 = vst [vmem:[#allocation10 + $0x28] sm:$0xff] %v698_v54  ;;  %v697_v58 = vadd.f32 %v1212_v34, %v548_v55  ;;  %v563_v59 = vadd.f32 %v996_v57, %v916_v56  ;;  %v332_v60 = vpop.f32.mrf.mxu0 }
 0x122   :  { %v557_v61 = vpop.f32.mrf.mxu1 }
 0x123   :  { %729 = vst [vmem:[#allocation10 + $0x20] sm:$0xff] %v697_v58  ;;  %v700_v62 = vadd.f32 %v1212_v34, %v563_v59  ;;  %v558_v63 = vadd.f32 %v557_v61, %v332_v60  ;;  %v919_v0 = vpop.f32.mrf.mxu0 }
 0x124   :  { %v999_v1 = vpop.f32.mrf.mxu1 }
 0x125   :  { %732 = vst [vmem:[#allocation10 + $0x38] sm:$0xff] %v700_v62  ;;  %v699_v2 = vadd.f32 %v1212_v34, %v558_v63  ;;  %v573_v3 = vadd.f32 %v999_v1, %v919_v0  ;;  %v342_v4 = vpop.f32.mrf.mxu0 }
 0x126   :  { %v567_v5 = vpop.f32.mrf.mxu1 }
 0x127   :  { %731 = vst [vmem:[#allocation10 + $0x30] sm:$0xff] %v699_v2  ;;  %v702_v6 = vadd.f32 %v1212_v34, %v573_v3  ;;  %v568_v7 = vadd.f32 %v567_v5, %v342_v4  ;;  %v922_v8 = vpop.f32.mrf.mxu0 }
 0x128   :  { %v1002_v9 = vpop.f32.mrf.mxu1 }
 0x129   :  { %734 = vst [vmem:[#allocation10 + $0x48] sm:$0xff] %v702_v6  ;;  %v701_v10 = vadd.f32 %v1212_v34, %v568_v7  ;;  %v583_v11 = vadd.f32 %v1002_v9, %v922_v8  ;;  %v352_v12 = vpop.f32.mrf.mxu0 }
 0x12a   :  { %v577_v13 = vpop.f32.mrf.mxu1 }
 0x12b   :  { %733 = vst [vmem:[#allocation10 + $0x40] sm:$0xff] %v701_v10  ;;  %v704_v14 = vadd.f32 %v1212_v34, %v583_v11  ;;  %v578_v15 = vadd.f32 %v577_v13, %v352_v12  ;;  %v925_v16 = vpop.f32.mrf.mxu0 }
 0x12c   :  { %v1005_v17 = vpop.f32.mrf.mxu1 }
 0x12d   :  { %736 = vst [vmem:[#allocation10 + $0x58] sm:$0xff] %v704_v14  ;;  %v703_v18 = vadd.f32 %v1212_v34, %v578_v15  ;;  %v593_v19 = vadd.f32 %v1005_v17, %v925_v16  ;;  %v362_v20 = vpop.f32.mrf.mxu0 }
 0x12e   :  { %v587_v21 = vpop.f32.mrf.mxu1 }
 0x12f   :  { %735 = vst [vmem:[#allocation10 + $0x50] sm:$0xff] %v703_v18  ;;  %v706_v22 = vadd.f32 %v1212_v34, %v593_v19  ;;  %v588_v23 = vadd.f32 %v587_v21, %v362_v20  ;;  %v928_v24 = vpop.f32.mrf.mxu0 }
 0x130   :  { %v1008_v25 = vpop.f32.mrf.mxu1 }
 0x131   :  { %738 = vst [vmem:[#allocation10 + $0x68] sm:$0xff] %v706_v22  ;;  %v705_v26 = vadd.f32 %v1212_v34, %v588_v23  ;;  %v603_v27 = vadd.f32 %v1008_v25, %v928_v24  ;;  %v372_v28 = vpop.f32.mrf.mxu0 }
 0x132   :  { %v597_v29 = vpop.f32.mrf.mxu1 }
 0x133   :  { %737 = vst [vmem:[#allocation10 + $0x60] sm:$0xff] %v705_v26  ;;  %v708_v30 = vadd.f32 %v1212_v34, %v603_v27  ;;  %v598_v31 = vadd.f32 %v597_v29, %v372_v28  ;;  %v931_v32 = vpop.f32.mrf.mxu0 }
 0x134   :  { %v1011_v33 = vpop.f32.mrf.mxu1 }
 0x135   :  { %740 = vst [vmem:[#allocation10 + $0x78] sm:$0xff] %v708_v30  ;;  %v707_v35 = vadd.f32 %v1212_v34, %v598_v31  ;;  %v613_v36 = vadd.f32 %v1011_v33, %v931_v32  ;;  %v382_v37 = vpop.f32.mrf.mxu0 }
 0x136   :  { %v607_v38 = vpop.f32.mrf.mxu1 }
 0x137   :  { %739 = vst [vmem:[#allocation10 + $0x70] sm:$0xff] %v707_v35  ;;  %v710_v39 = vadd.f32 %v1212_v34, %v613_v36  ;;  %v608_v40 = vadd.f32 %v607_v38, %v382_v37  ;;  %v934_v41 = vpop.f32.mrf.mxu0 }
 0x138   :  { %v1014_v42 = vpop.f32.mrf.mxu1 }
 0x139   :  { %742 = vst [vmem:[#allocation10 + $0x88] sm:$0xff] %v710_v39  ;;  %v709_v43 = vadd.f32 %v1212_v34, %v608_v40  ;;  %v623_v44 = vadd.f32 %v1014_v42, %v934_v41  ;;  %v392_v45 = vpop.f32.mrf.mxu0 }
 0x13a   :  { %v617_v46 = vpop.f32.mrf.mxu1 }
 0x13b   :  { %741 = vst [vmem:[#allocation10 + $0x80] sm:$0xff] %v709_v43  ;;  %v712_v47 = vadd.f32 %v1212_v34, %v623_v44  ;;  %v618_v48 = vadd.f32 %v617_v46, %v392_v45  ;;  %v937_v49 = vpop.f32.mrf.mxu0 }
 0x13c   :  { %v1017_v50 = vpop.f32.mrf.mxu1 }
 0x13d   :  { %744 = vst [vmem:[#allocation10 + $0x98] sm:$0xff] %v712_v47  ;;  %v711_v51 = vadd.f32 %v1212_v34, %v618_v48  ;;  %v633_v52 = vadd.f32 %v1017_v50, %v937_v49  ;;  %v402_v53 = vpop.f32.mrf.mxu0 }
 0x13e   :  { %v627_v54 = vpop.f32.mrf.mxu1 }
 0x13f   :  { %743 = vst [vmem:[#allocation10 + $0x90] sm:$0xff] %v711_v51  ;;  %v714_v55 = vadd.f32 %v1212_v34, %v633_v52  ;;  %v628_v56 = vadd.f32 %v627_v54, %v402_v53  ;;  %v940_v57 = vpop.f32.mrf.mxu0 }
 0x140   :  { %v1020_v58 = vpop.f32.mrf.mxu1 }
 0x141   :  { %746 = vst [vmem:[#allocation10 + $0xa8] sm:$0xff] %v714_v55  ;;  %v713_v59 = vadd.f32 %v1212_v34, %v628_v56  ;;  %v643_v60 = vadd.f32 %v1020_v58, %v940_v57  ;;  %v412_v61 = vpop.f32.mrf.mxu0 }
 0x142   :  { %v637_v62 = vpop.f32.mrf.mxu1 }
 0x143   :  { %745 = vst [vmem:[#allocation10 + $0xa0] sm:$0xff] %v713_v59  ;;  %v716_v63 = vadd.f32 %v1212_v34, %v643_v60  ;;  %v638_v0 = vadd.f32 %v637_v62, %v412_v61  ;;  %v943_v1 = vpop.f32.mrf.mxu0 }
 0x144   :  { %v1023_v2 = vpop.f32.mrf.mxu1 }
 0x145   :  { %748 = vst [vmem:[#allocation10 + $0xb8] sm:$0xff] %v716_v63  ;;  %v715_v3 = vadd.f32 %v1212_v34, %v638_v0  ;;  %v653_v4 = vadd.f32 %v1023_v2, %v943_v1  ;;  %v422_v5 = vpop.f32.mrf.mxu0 }
 0x146   :  { %v647_v6 = vpop.f32.mrf.mxu1 }
 0x147   :  { %747 = vst [vmem:[#allocation10 + $0xb0] sm:$0xff] %v715_v3  ;;  %v718_v7 = vadd.f32 %v1212_v34, %v653_v4  ;;  %v648_v8 = vadd.f32 %v647_v6, %v422_v5  ;;  %v946_v9 = vpop.f32.mrf.mxu0 }
 0x148   :  { %v1026_v10 = vpop.f32.mrf.mxu1 }
 0x149   :  { %750 = vst [vmem:[#allocation10 + $0xc8] sm:$0xff] %v718_v7  ;;  %v717_v11 = vadd.f32 %v1212_v34, %v648_v8  ;;  %v663_v12 = vadd.f32 %v1026_v10, %v946_v9  ;;  %v432_v13 = vpop.f32.mrf.mxu0 }
 0x14a   :  { %v657_v14 = vpop.f32.mrf.mxu1 }
 0x14b   :  { %749 = vst [vmem:[#allocation10 + $0xc0] sm:$0xff] %v717_v11  ;;  %v720_v15 = vadd.f32 %v1212_v34, %v663_v12  ;;  %v658_v16 = vadd.f32 %v657_v14, %v432_v13  ;;  %v949_v17 = vpop.f32.mrf.mxu0 }
 0x14c   :  { %v1029_v18 = vpop.f32.mrf.mxu1 }
 0x14d   :  { %752 = vst [vmem:[#allocation10 + $0xd8] sm:$0xff] %v720_v15  ;;  %v719_v19 = vadd.f32 %v1212_v34, %v658_v16  ;;  %v673_v20 = vadd.f32 %v1029_v18, %v949_v17  ;;  %v442_v21 = vpop.f32.mrf.mxu0 }
 0x14e   :  { %v667_v22 = vpop.f32.mrf.mxu1 }
 0x14f   :  { %751 = vst [vmem:[#allocation10 + $0xd0] sm:$0xff] %v719_v19  ;;  %v722_v23 = vadd.f32 %v1212_v34, %v673_v20  ;;  %v668_v24 = vadd.f32 %v667_v22, %v442_v21  ;;  %v952_v25 = vpop.f32.mrf.mxu0 }
 0x150   :  { %v1032_v26 = vpop.f32.mrf.mxu1 }
 0x151   :  { %754 = vst [vmem:[#allocation10 + $0xe8] sm:$0xff] %v722_v23  ;;  %v721_v27 = vadd.f32 %v1212_v34, %v668_v24  ;;  %v683_v28 = vadd.f32 %v1032_v26, %v952_v25  ;;  %v452_v29 = vpop.f32.mrf.mxu0 }
 0x152   :  { %v677_v30 = vpop.f32.mrf.mxu1 }
 0x153   :  { %753 = vst [vmem:[#allocation10 + $0xe0] sm:$0xff] %v721_v27  ;;  %v724_v31 = vadd.f32 %v1212_v34, %v683_v28  ;;  %v678_v32 = vadd.f32 %v677_v30, %v452_v29 }
 0x155   :  { %756 = vst [vmem:[#allocation10 + $0xf8] sm:$0xff] %v724_v31  ;;  %v723_v33 = vadd.f32 %v1212_v34, %v678_v32 }
 0x157   :  { %755 = vst [vmem:[#allocation10 + $0xf0] sm:$0xff] %v723_v33 }
 0x158   :  { %1131 = shalt.err (!%p1128_p10)
}
 0x159   :  { %768 = dma.vmem_to_hbm [thread:$0]  %s763_s13, 4096, %s1257_s5, [#allocation4], %s1150_s23, %s1150_s23, %s1151_s24  }
 0x15a   :  { %1146 = dma.done.wait [#allocation4], 4096  }
 0x15b   :  { %1147 = vsyncadd [#allocation4], 4294963200 }
 0x15c   :  { %772 = vsyncpa [#allocation3], 1 }
 0x15d   :  { %773 = vsyncpa [#allocation6], 1 }
 0x15e   :  { %774 = vsyncpa [#allocation9], 1 }
 0x15f   :  { %775 = vsyncpa [#allocation4], 1 }

</bundles_post_ra>
